<compile_context>
chip_gen: v7x
topology: tpu7x:2x2x1
jax: 0.10.0
libtpu: 0.0.40
codegen_flags: <defaults>
</compile_context>

<pallas_src>
import numpy as np
import jax
import jax.numpy as jnp
from jax.experimental import pallas as pl
from jax.experimental.pallas import tpu as pltpu


# ----------------------------------------------------------------------------
# Pallas kernel: bilinear combine of the 4 corners fused with the stride-ks
# conv, expressed as (TM,4N)@(4N,4NC) expand, elementwise multiply, and a
# single (TM,4NC)@(4NC,OCP) MXU matmul with f32 accumulation.
# ----------------------------------------------------------------------------
def _make_combine_conv_kernel(combine_dtype):
    def kernel(x_ref, g_ref, e_ref, w_ref, o_ref):
        # x_ref : (TM, 4*N*C)  bf16 gathered corner values, lane order k*N*C+n*C+c
        # g_ref : (TM, 4*N)    bf16 bilinear weights, lane order k*N+n
        # e_ref : (4N, 4NC)    bf16 constant 0/1 expansion (broadcast g over C)
        # w_ref : (4NC, OCP)   bf16 conv weight stacked 4x along K, VMEM resident
        # o_ref : (TM, OCP)    f32 output tile
        gexp = jax.lax.dot_general(
            g_ref[...], e_ref[...],
            dimension_numbers=(((1,), (0,)), ((), ())),
            preferred_element_type=jnp.float32)            # (TM, 4NC)

        # Bilinear combine: bf16 on v6e/v7x (bf16 VALU), f32 fallback on v5e.
        x_off = gexp.astype(combine_dtype) * x_ref[...].astype(combine_dtype)

        # Fused "stride-ks conv": one MXU matmul over the fused 4*N*C axis,
        # bf16 operands, f32 accumulation.
        acc = jax.lax.dot_general(
            x_off.astype(w_ref.dtype), w_ref[...],
            dimension_numbers=(((1,), (0,)), ((), ())),
            preferred_element_type=jnp.float32)
        o_ref[...] = acc.astype(o_ref.dtype)
    return kernel


def _choose_tm(R, tm_target):
    # Large tiles amortize the ~0.35us/step overhead; prefer multiples of 128
    # (full MXU row passes, bf16 sublane packing). Aim for >= 2 tiles when R
    # allows it so the 2-TC v7x megacore split is balanced.
    half = ((-(-R // 2)) + 127) // 128 * 128
    tm = min(tm_target, max(128, half))
    tm = max(16, (tm // 16) * 16)
    return tm


def _deform_combine_conv(xcat, gcat, e_mat, w_mat, *, tm=512,
                         combine_dtype=jnp.float32, vmem_limit_bytes=None):
    """xcat (R, 4NC), gcat (R, 4N), e_mat (4N, 4NC), w_mat (4NC, OCP)."""
    R, KC = xcat.shape
    K4 = gcat.shape[1]
    OCP = w_mat.shape[1]

    tm = _choose_tm(R, tm)
    n_tiles = -(-R // tm)
    Rp = n_tiles * tm
    if Rp != R:
        # Full tiles only: no OOB reads in the last block, exact grid split.
        xcat = jnp.pad(xcat, ((0, Rp - R), (0, 0)))
        gcat = jnp.pad(gcat, ((0, Rp - R), (0, 0)))

    if vmem_limit_bytes is None:
        # Explicit per-step VMEM budget: double-buffered streams + output tile
        # + resident E/W, with headroom; capped below v7x's 64 MiB physical.
        per_step = 2 * (tm * KC * xcat.dtype.itemsize
                        + tm * K4 * gcat.dtype.itemsize
                        + tm * OCP * 4)
        resident = K4 * KC * e_mat.dtype.itemsize + KC * OCP * w_mat.dtype.itemsize
        vmem_limit_bytes = int(min(max(2 * (per_step + resident), 32 << 20), 48 << 20))

    out = pl.pallas_call(
        _make_combine_conv_kernel(combine_dtype),
        out_shape=jax.ShapeDtypeStruct((Rp, OCP), jnp.float32),
        grid=(n_tiles,),
        in_specs=[
            pl.BlockSpec((tm, KC), lambda i: (i, 0)),
            pl.BlockSpec((tm, K4), lambda i: (i, 0)),
            pl.BlockSpec((K4, KC), lambda i: (0, 0)),    # resident constant E4
            pl.BlockSpec((KC, OCP), lambda i: (0, 0)),   # resident conv weight
        ],
        out_specs=pl.BlockSpec((tm, OCP), lambda i: (i, 0)),
        compiler_params=pltpu.CompilerParams(
            dimension_semantics=("parallel",),           # megacore-friendly
            vmem_limit_bytes=vmem_limit_bytes),
    )(xcat, gcat, e_mat, w_mat)
    return out[:R]


def _default_combine_dtype():
    # v6e/v7x have a bf16 VALU -> bf16 combine; v5e and older fall back to f32.
    try:
        kind = jax.devices()[0].device_kind.lower()
    except Exception:
        return jnp.float32
    return jnp.bfloat16 if ("v6" in kind or "v7" in kind) else jnp.float32


# ----------------------------------------------------------------------------
# Geometry (sampling coordinates + bilinear weights), identical to the module.
# ----------------------------------------------------------------------------
def _deform_geometry(offset, H, W, Hp, Wp, ks, padding):
    """offset: (B, 2N, H, W), already de-interleaved (all x, then all y)."""
    N = offset.shape[1] // 2

    # p = p_0 + p_n + offset.  NOTE: like the PyTorch module, p_0 starts at 1,
    # which matches the module exactly (and is only geometrically sensible for
    # padding == 1; asserted in the wrapper).
    rng = np.arange(-(ks - 1) // 2, (ks - 1) // 2 + 1)
    p_n_x, p_n_y = np.meshgrid(rng, rng, indexing="ij")
    p_n = np.concatenate([p_n_x.flatten(), p_n_y.flatten()]).reshape(1, 2 * N, 1, 1)
    p_0_x, p_0_y = np.meshgrid(np.arange(1, H + 1), np.arange(1, W + 1), indexing="ij")
    p_0_x = np.tile(p_0_x.reshape(1, 1, H, W), (1, N, 1, 1))
    p_0_y = np.tile(p_0_y.reshape(1, 1, H, W), (1, N, 1, 1))
    p_0 = np.concatenate([p_0_x, p_0_y], axis=1)
    p = jnp.asarray(p_0 + p_n, dtype=jnp.float32) + offset
    p = jnp.transpose(p, (0, 2, 3, 1))                         # (B, H, W, 2N)

    q_lt = jnp.floor(p)
    q_rb = q_lt + 1.0
    q_lt = jnp.concatenate([jnp.clip(q_lt[..., :N], 0, Hp - 1),
                            jnp.clip(q_lt[..., N:], 0, Wp - 1)], -1).astype(jnp.int32)
    q_rb = jnp.concatenate([jnp.clip(q_rb[..., :N], 0, Hp - 1),
                            jnp.clip(q_rb[..., N:], 0, Wp - 1)], -1).astype(jnp.int32)
    q_lb = jnp.concatenate([q_lt[..., :N], q_rb[..., N:]], -1)
    q_rt = jnp.concatenate([q_rb[..., :N], q_lt[..., N:]], -1)

    mask = jnp.concatenate(
        [jnp.logical_or(p[..., :N] < padding, p[..., :N] > Hp - 1 - padding),
         jnp.logical_or(p[..., N:] < padding, p[..., N:] > Wp - 1 - padding)],
        axis=-1).astype(p.dtype)
    floor_p = jnp.floor(p)
    p = p * (1.0 - mask) + floor_p * mask
    p = jnp.concatenate([jnp.clip(p[..., :N], 0, Hp - 1),
                         jnp.clip(p[..., N:], 0, Wp - 1)], -1)

    def _g(q, sx, sy):
        qx = q[..., :N].astype(p.dtype)
        qy = q[..., N:].astype(p.dtype)
        return (1.0 + sx * (qx - p[..., :N])) * (1.0 + sy * (qy - p[..., N:]))

    g_lt = _g(q_lt, +1.0, +1.0)
    g_rb = _g(q_rb, -1.0, -1.0)
    g_lb = _g(q_lb, +1.0, -1.0)
    g_rt = _g(q_rt, -1.0, +1.0)
    return (q_lt, q_rb, q_lb, q_rt), (g_lt, g_rb, g_lb, g_rt)


# ----------------------------------------------------------------------------
# DeformConv2D forward (geometry + one fused gather in JAX, hot path in Pallas)
# ----------------------------------------------------------------------------
def deform_conv2d_forward(x, offset, weight, kernel_size=3, padding=1,
                          *, tm=512, stream_dtype=jnp.bfloat16,
                          combine_dtype=None, vmem_limit_bytes=None):
    """x: (B,C,H,W) f32; offset: (B,2N,H,W) f32; weight: (outC,C,ks,ks) f32."""
    ks = kernel_size
    assert padding == 1, "module geometry (p_0 starting at 1) assumes padding == 1"
    B, C, H, W = x.shape
    N = offset.shape[1] // 2
    assert N == ks * ks
    outC = weight.shape[0]
    if combine_dtype is None:
        combine_dtype = _default_combine_dtype()

    # De-interleave offsets: (x0,y0,x1,y1,...) -> all x offsets, then all y.
    reorder = jnp.concatenate([jnp.arange(0, 2 * N, 2), jnp.arange(1, 2 * N + 1, 2)])
    offset = offset[:, reorder]

    x_pad = jnp.pad(x, ((0, 0), (0, 0), (padding, padding), (padding, padding)))
    Hp, Wp = H + 2 * padding, W + 2 * padding

    (q_lt, q_rb, q_lb, q_rt), (g_lt, g_rb, g_lb, g_rt) = _deform_geometry(
        offset, H, W, Hp, Wp, ks, padding)

    # NHWC-flattened padded image in bf16: one fused gather for all 4 corners,
    # yielding lane order k*N*C + n*C + c directly (no big transposes).
    x_flat = jnp.transpose(x_pad, (0, 2, 3, 1)).reshape(B, Hp * Wp, C).astype(stream_dtype)

    HW = H * W
    R = B * HW
    NC = N * C

    def _flat_idx(q):
        return q[..., :N] * Wp + q[..., N:]                       # (B,H,W,N) int32

    # TODO(synk): this gather still materializes one (R, 4*N*C) bf16 stream in
    # HBM; an in-kernel dynamic row-gather of the VMEM-resident padded image
    # would remove that round trip entirely.
    idx_all = jnp.stack([_flat_idx(q_lt), _flat_idx(q_rb),
                         _flat_idx(q_lb), _flat_idx(q_rt)], axis=3)  # (B,H,W,4,N)
    idx_all = idx_all.reshape(B, HW * 4 * N, 1)
    vals = jnp.take_along_axis(
        x_flat, jnp.broadcast_to(idx_all, (B, HW * 4 * N, C)), axis=1)
    xcat = vals.reshape(R, 4 * NC)                                  # bf16

    # Bilinear weights, one (R, 4N) bf16 stream (broadcast over C in-kernel).
    gcat = jnp.stack([g_lt, g_rb, g_lb, g_rt], axis=3).reshape(R, 4 * N).astype(stream_dtype)

    # Constant expansion E4[k*N+n, k*N*C + n*C + c] = 1 (0/1 exact in bf16).
    e_mat = jnp.asarray(np.kron(np.eye(4 * N, dtype=np.float32),
                                np.ones((1, C), dtype=np.float32))).astype(stream_dtype)

    # Conv weight (outC,C,ks,ks) -> (N*C,outC), row order n*C + c; pad the
    # output dim only when outC is large enough for dense stores to pay off,
    # then stack 4x along K to match the concatenated corner stream.
    ocp = outC if outC <= 64 else ((outC + 127) // 128) * 128
    w_mat = jnp.transpose(weight, (2, 3, 1, 0)).reshape(NC, outC)
    if ocp != outC:
        w_mat = jnp.pad(w_mat, ((0, 0), (0, ocp - outC)))
    w_mat = jnp.tile(w_mat, (4, 1)).astype(stream_dtype)            # (4NC, OCP)

    out = _deform_combine_conv(xcat, gcat, e_mat, w_mat, tm=tm,
                               combine_dtype=combine_dtype,
                               vmem_limit_bytes=vmem_limit_bytes)
    out = out[:, :outC].reshape(B, H, W, outC)
    return jnp.transpose(out, (0, 3, 1, 2))      # NCHW, matching the PyTorch module


# ----------------------------------------------------------------------------
# Pure-JAX f32 reference (mirrors the PyTorch module; gather + einsum that is
# algebraically identical to _reshape_x_offset + stride-ks Conv2d).
# ----------------------------------------------------------------------------
def deform_conv2d_reference(x, offset, weight, kernel_size=3, padding=1):
    ks = kernel_size
    B, C, H, W = x.shape
    N = offset.shape[1] // 2
    outC = weight.shape[0]

    reorder = jnp.concatenate([jnp.arange(0, 2 * N, 2), jnp.arange(1, 2 * N + 1, 2)])
    offset = offset[:, reorder]
    x_pad = jnp.pad(x, ((0, 0), (0, 0), (padding, padding), (padding, padding)))
    Hp, Wp = H + 2 * padding, W + 2 * padding

    (q_lt, q_rb, q_lb, q_rt), (g_lt, g_rb, g_lb, g_rt) = _deform_geometry(
        offset, H, W, Hp, Wp, ks, padding)

    x_flat = x_pad.reshape(B, C, Hp * Wp)

    def _gather(q):
        idx = (q[..., :N] * Wp + q[..., N:]).reshape(B, 1, H * W * N)
        v = jnp.take_along_axis(x_flat, jnp.broadcast_to(idx, (B, C, H * W * N)), -1)
        return v.reshape(B, C, H, W, N)

    x_off = (g_lt[:, None] * _gather(q_lt) + g_rb[:, None] * _gather(q_rb)
             + g_lb[:, None] * _gather(q_lb) + g_rt[:, None] * _gather(q_rt))
    return jnp.einsum("bchwn,ocn->bohw", x_off, weight.reshape(outC, C, N))


# ----------------------------------------------------------------------------
# Main
# ----------------------------------------------------------------------------
if __name__ == "__main__":
    key = jax.random.PRNGKey(0)
    B, C, H, W = 2, 4, 16, 16
    ks, padding, outC = 3, 1, 8
    N = ks * ks

    k1, k2, k3 = jax.random.split(key, 3)
    x = jax.random.normal(k1, (B, C, H, W), dtype=jnp.float32)
    offset = 0.5 * jax.random.normal(k2, (B, 2 * N, H, W), dtype=jnp.float32)
    weight = 0.1 * jax.random.normal(k3, (outC, C, ks, ks), dtype=jnp.float32)

    fwd = jax.jit(lambda a, b, c: deform_conv2d_forward(
        a, b, c, kernel_size=ks, padding=padding))
    out = jax.block_until_ready(fwd(x, offset, weight))
    assert out.shape == (B, outC, H, W), out.shape
    assert bool(jnp.all(jnp.isfinite(out)))

    ref = jax.block_until_ready(
        deform_conv2d_reference(x, offset, weight, kernel_size=ks, padding=padding))
    # Combined abs/rel tolerance (bf16 streams, f32 accumulation).
    err_ok = bool(jnp.all(jnp.abs(out - ref) <= 5e-2 + 2e-2 * jnp.abs(ref)))
    assert err_ok, f"max abs error {float(jnp.max(jnp.abs(out - ref)))} too large"

    print("KERNEL_OK")
</pallas_src>

<mosaic_0001>
module attributes {stable_mosaic.version = 11 : i64} {
  func.func @kernel(%arg0: i32, %arg1: memref<256x144xbf16, #tpu.memory_space<vmem>>, %arg2: memref<256x36xbf16, #tpu.memory_space<vmem>>, %arg3: memref<36x144xbf16, #tpu.memory_space<vmem>>, %arg4: memref<144x8xbf16, #tpu.memory_space<vmem>>, %arg5: memref<256x8xf32, #tpu.memory_space<vmem>>) attributes {dimension_semantics = [#tpu.dimension_semantics<parallel>], iteration_bounds = array<i64: 2>, scalar_prefetch = 0 : i64, scratch_operands = 0 : i64, tpu.core_type = #tpu.core_type<tc>, window_params = [{transform_indices = @transform_0, window_bounds = array<i64: 256, 144>}, {transform_indices = @transform_1, window_bounds = array<i64: 256, 36>}, {pipeline_mode = #tpu.pipeline_mode<synchronous>, transform_indices = @transform_2, window_bounds = array<i64: 36, 144>}, {pipeline_mode = #tpu.pipeline_mode<synchronous>, transform_indices = @transform_3, window_bounds = array<i64: 144, 8>}, {transform_indices = @transform_4, window_bounds = array<i64: 256, 8>}]} {
    %c0 = arith.constant 0 : index
    %c0_0 = arith.constant 0 : index
    %0 = vector.load %arg2[%c0, %c0_0] : memref<256x36xbf16, #tpu.memory_space<vmem>>, vector<256x36xbf16>
    %c0_1 = arith.constant 0 : index
    %c0_2 = arith.constant 0 : index
    %1 = vector.load %arg3[%c0_1, %c0_2] : memref<36x144xbf16, #tpu.memory_space<vmem>>, vector<36x144xbf16>
    %cst = arith.constant dense<0.000000e+00> : vector<256x144xf32>
    %2 = tpu.matmul %0, %1, %cst {dimension_numbers = #tpu.dot_dimension_numbers<[1], [0], [0], [1], [0, 0, 1, 1], [], []>} : vector<256x36xbf16>, vector<36x144xbf16>, vector<256x144xf32> -> vector<256x144xf32>
    %c0_3 = arith.constant 0 : index
    %c0_4 = arith.constant 0 : index
    %3 = vector.load %arg1[%c0_3, %c0_4] : memref<256x144xbf16, #tpu.memory_space<vmem>>, vector<256x144xbf16>
    %4 = arith.extf %3 : vector<256x144xbf16> to vector<256x144xf32>
    %5 = arith.mulf %2, %4 : vector<256x144xf32>
    %6 = arith.truncf %5 : vector<256x144xf32> to vector<256x144xbf16>
    %c0_5 = arith.constant 0 : index
    %c0_6 = arith.constant 0 : index
    %7 = vector.load %arg4[%c0_5, %c0_6] : memref<144x8xbf16, #tpu.memory_space<vmem>>, vector<144x8xbf16>
    %cst_7 = arith.constant dense<0.000000e+00> : vector<256x8xf32>
    %8 = tpu.matmul %6, %7, %cst_7 {dimension_numbers = #tpu.dot_dimension_numbers<[1], [0], [0], [1], [0, 0, 1, 1], [], []>} : vector<256x144xbf16>, vector<144x8xbf16>, vector<256x8xf32> -> vector<256x8xf32>
    %c0_8 = arith.constant 0 : index
    %c0_9 = arith.constant 0 : index
    %9 = vector.load %arg5[%c0_8, %c0_9] : memref<256x8xf32, #tpu.memory_space<vmem>>, vector<256x8xf32>
    tpu.vector_store %arg5[%c0_8, %c0_9], %8 {strides = array<i32>} : memref<256x8xf32, #tpu.memory_space<vmem>>, vector<256x8xf32>,
    return
  }
  func.func @transform_0(%arg0: i32) -> (i32, i32) {
    %c0_i32 = arith.constant 0 : i32
    %c0_i32_0 = arith.constant 0 : i32
    return %arg0, %c0_i32 : i32, i32
  }
  func.func @transform_1(%arg0: i32) -> (i32, i32) {
    %c0_i32 = arith.constant 0 : i32
    %c0_i32_0 = arith.constant 0 : i32
    return %arg0, %c0_i32 : i32, i32
  }
  func.func @transform_2(%arg0: i32) -> (i32, i32) {
    %c0_i32 = arith.constant 0 : i32
    %c0_i32_0 = arith.constant 0 : i32
    %c0_i32_1 = arith.constant 0 : i32
    return %c0_i32, %c0_i32_0 : i32, i32
  }
  func.func @transform_3(%arg0: i32) -> (i32, i32) {
    %c0_i32 = arith.constant 0 : i32
    %c0_i32_0 = arith.constant 0 : i32
    %c0_i32_1 = arith.constant 0 : i32
    return %c0_i32, %c0_i32_0 : i32, i32
  }
  func.func @transform_4(%arg0: i32) -> (i32, i32) {
    %c0_i32 = arith.constant 0 : i32
    %c0_i32_0 = arith.constant 0 : i32
    return %arg0, %c0_i32 : i32, i32
  }
}

</mosaic_0001>

<bundles_post_ra>
// kernel: _lambda_.1
= control target key start
LH: loop header
LB: loop body
LE: loop exit
PB: predicated region body
PF: predicated region fallthrough
CT: control target
= control target key end

     0   :  { %s1366_s15 = smov 0   ;;  %s1620_s0 = inlined_call_operand.vmem [shape: bf16[512,144], index: 0, kind: input, shape index: {}]   ;;  %s1621_s1 = inlined_call_operand.vmem [shape: bf16[512,36], index: 1, kind: input, shape index: {}]   ;;  %s1622_s2 = inlined_call_operand.vmem [shape: bf16[36,144], index: 2, kind: input, shape index: {}]   ;;  %s1623_s3 = inlined_call_operand.vmem [shape: bf16[144,8], index: 3, kind: input, shape index: {}]   ;;  %s1624_s4 = inlined_call_operand.vmem [shape: f32[512,8], index: 4, kind: output, shape index: {}]  }
   0x1 LB: > { %s1193_s16 = sadd.s32 4294967295, %s1338_s15   ;;  %p1197_p0 = scmp.ge.s32.totalorder %s1338_s15, 1  ;;  %s1338_s15 = sphi %s1366_s15, %s14_s15  }
   0x2   : > { %p175_p1 = scmp.lt.s32.totalorder %s1338_s15, 3 }
   0x4   : > { %p176_p2 = pnand %p1197_p0, %p175_p1 }
   0x5   : > { %v1299_v0 = vld [vmem:[%s1622_s2 + $0x4] ss:$8 sps:$4 sm:$0xff] (!%p176_p2)   ;;  %v1301_v1 = vld [vmem:[%s1622_s2] ss:$8 sps:$4 sm:$0xff] (!%p176_p2)   ;;  %v1340_v2 = vmov (!%p176_p2), 0   ;;  %s1198_s21 = sshll.u32 (!%p176_p2), %s1193_s16, 5 }
   0x6   : > { %179 = sbr.rel (%p176_p2) target bundleno = 574 (0x23e), region = 36  ;;  %457 = vmatprep.mubr.bf16.mxu0 (!%p176_p2), %v1340_v2  ;;  %1272 = vmatprep.subr.bf16.mxu1 (!%p176_p2), %v1340_v2  ;;  %v1302_v3 = vld [vmem:[%s1622_s2 + $0x14] ss:$8 sps:$4 sm:$0xff] (!%p176_p2)   ;;  %v1304_v4 = vld [vmem:[%s1622_s2 + $0x10] ss:$8 sps:$4 sm:$0xff] (!%p176_p2)   ;;  %vm418_vm0 = vcmask (!%p176_p2), 1041408  }
   0x7   : > { %425 = vmatprep.subr.bf16.mxu0 (!%p176_p2), %v1299_v0  ;;  %v263_v5 = vld [vmem:[%s1622_s2 + $0x20] sm:$0x33] (!%p176_p2)  ;;  %p208_p3 = scmp.lt.s32.totalorder (!%p176_p2), %s1198_s21, 63  ;;  %v1324_v10 = vld [vmem:[%s1623_s3 + $0x8] sm:$0xff] (!%p176_p2)   ;;  %vm369_vm1 = vcmask (!%p176_p2), 293888   ;;  %v1325_v12 = vld [vmem:[%s1623_s3 + $0x10] sm:$0xff] (!%p176_p2)  }
   0x8   : > { %426 = vmatpush1.bf16.msra.mxu0 (!%p176_p2), %v1301_v1  ;;  %v1225_v6 = vcombine.low (!%p176_p2), %v263_v5, %v263_v5  ;;  %v1226_v7 = vcombine.high (!%p176_p2), %v263_v5, %v263_v5  ;;  %v1323_v8 = vld [vmem:[%s1623_s3] sm:$0xff] (!%p176_p2)   ;;  %v1326_v13 = vld [vmem:[%s1623_s3 + $0x18] sm:$0xff] (!%p176_p2)   ;;  %v1328_v17 = vld [vmem:[%s1623_s3 + $0x28] sm:$0xff] (!%p176_p2)   ;;  %vm882_vm2 = vcmask (!%p176_p2), 130048   ;;  %vm1092_vm3 = vcmask (!%p176_p2), 64512  }
   0x9   : > { %427 = vmatprep.subr.bf16.mxu0 (!%p176_p2), %v1302_v3  ;;  %1281 = vmatpush1.bf16.msra.mxu1 (!%p176_p2), %v1323_v8  ;;  %v1327_v15 = vld [vmem:[%s1623_s3 + $0x20] sm:$0xff] (!%p176_p2)   ;;  %v1329_v18 = vld [vmem:[%s1623_s3 + $0x30] sm:$0xff] (!%p176_p2)   ;;  %v1330_v27 = vld [vmem:[%s1623_s3 + $0x38] sm:$0xff] (!%p176_p2)  }
   0xa   : > { %v420_v9 = vsel (!%p176_p2), %vm418_vm0, %v1225_v6, 0  ;;  %1273 = vmatprep.subr.bf16.mxu1 (!%p176_p2), %v1340_v2  ;;  %v1331_v29 = vld [vmem:[%s1623_s3 + $0x40] sm:$0xff] (!%p176_p2)  }
   0xc   : > { %428 = vmatpush1.bf16.msra.mxu0 (!%p176_p2), %v1304_v4 }
   0xd   : > { %s1626_s21 = smov (!%p208_p3, %s1198_s21), 63  ;;  %1227 = vmatprep.subr.msk.bf16.mxu0 %vm418_vm0, %v1226_v7  ;;  %1282 = vmatpush1.bf16.msra.mxu1 %v1324_v10 }
   0xe   : > { %s1202_s30 = sshll.u32 %s1626_s21, 2  ;;  %1274 = vmatprep.subr.bf16.mxu1 %v1340_v2  ;;  %s1271_s26 = sshll.u32 %s1626_s21, 3 }
   0xf   : > { %s1400_s7 = scalar_lea.vmem %s1621_s1, %s1202_s30  ;;  %s1496_s29 = scalar_lea.vmem %s1620_s0, %s1271_s26 }
  0x10   : > { %v1307_v11 = vld [vmem:[%s1400_s7] sm:$0xff]   ;;  %430 = vmatpush1.bf16.msra.mxu0 %v420_v9  ;;  %v1308_v14 = vld [vmem:[%s1400_s7 + $0x8] sm:$0xff]   ;;  %v1309_v16 = vld [vmem:[%s1400_s7 + $0x10] sm:$0xff]   ;;  %s1551_s6 = scalar_lea.vmem %s1624_s4, %s1271_s26 }
  0x11   : > { %931 = vmatprep.subr.bf16.mxu0 %v1340_v2  ;;  %1283 = vmatpush1.bf16.msra.mxu1 %v1325_v12  ;;  %v1310_v19 = vld [vmem:[%s1400_s7 + $0x18] sm:$0xff]   ;;  %v1311_v20 = vld [vmem:[%s1400_s7 + $0x20] sm:$0xff]   ;;  %v1312_v21 = vld [vmem:[%s1400_s7 + $0x28] sm:$0xff]  }
  0x12   : > { %1275 = vmatprep.subr.bf16.mxu1 %v1340_v2  ;;  %v1313_v22 = vld [vmem:[%s1400_s7 + $0x30] sm:$0xff]   ;;  %v1314_v23 = vld [vmem:[%s1400_s7 + $0x38] sm:$0xff]   ;;  %v1315_v24 = vld [vmem:[%s1400_s7 + $0x40] sm:$0xff]  }
  0x13   : > { %1228 = vmatmul.mubr.msk.bf16.vlgmr.msra.gmra.mrb[0].mxu0 %vm369_vm1, %v1307_v11  ;;  %v1316_v25 = vld [vmem:[%s1400_s7 + $0x48] sm:$0xff]   ;;  %v1317_v26 = vld [vmem:[%s1400_s7 + $0x50] sm:$0xff]   ;;  %v1318_v28 = vld [vmem:[%s1400_s7 + $0x58] sm:$0xff]  }
  0x14   : > { %467 = vmatprep.mubr.bf16.mxu0 %v1340_v2  ;;  %932 = vmatpush1.bf16.msra.mxu0 %v1323_v8  ;;  %v1319_v30 = vld [vmem:[%s1400_s7 + $0x60] sm:$0xff]   ;;  %v1320_v31 = vld [vmem:[%s1400_s7 + $0x68] sm:$0xff]   ;;  %v1321_v32 = vld [vmem:[%s1400_s7 + $0x70] sm:$0xff]  }
  0x15   : > { %933 = vmatprep.subr.bf16.mxu0 %v1340_v2  ;;  %1284 = vmatpush1.bf16.msra.mxu1 %v1326_v13  ;;  %v1322_v33 = vld [vmem:[%s1400_s7 + $0x78] sm:$0xff]   ;;  %v618_v34 = vld [vmem:[%s1496_s29] sm:$0xff]  ;;  %v619_v35 = vld [vmem:[%s1496_s29 + $0x8] sm:$0xff] }
  0x16   : > { %1276 = vmatprep.subr.bf16.mxu1 %v1340_v2  ;;  %v650_v36 = vunpack.c.l.bf16 %v618_v34  ;;  %v652_v37 = vunpack.c.l.bf16 %v619_v35  ;;  %v651_v39 = vunpack.c.h.bf16 %v618_v34  ;;  %v653_v40 = vunpack.c.h.bf16 %v619_v35  ;;  %v620_v48 = vld [vmem:[%s1496_s29 + $0x10] sm:$0xff]  ;;  %v621_v49 = vld [vmem:[%s1496_s29 + $0x18] sm:$0xff]  ;;  %v622_v0 = vld [vmem:[%s1496_s29 + $0x20] sm:$0xff] }
  0x17   : > { %v654_v52 = vunpack.c.l.bf16 %v620_v48  ;;  %v656_v53 = vunpack.c.l.bf16 %v621_v49  ;;  %v655_v55 = vunpack.c.h.bf16 %v620_v48  ;;  %v657_v56 = vunpack.c.h.bf16 %v621_v49  ;;  %v623_v1 = vld [vmem:[%s1496_s29 + $0x28] sm:$0xff]  ;;  %v628_v48 = vld [vmem:[%s1496_s29 + $0x50] sm:$0xff]  ;;  %v629_v49 = vld [vmem:[%s1496_s29 + $0x58] sm:$0xff] }
  0x18   : > { %934 = vmatpush1.bf16.msra.mxu0 %v1324_v10  ;;  %v658_v4 = vunpack.c.l.bf16 %v622_v0  ;;  %v660_v5 = vunpack.c.l.bf16 %v623_v1  ;;  %v659_v7 = vunpack.c.h.bf16 %v622_v0  ;;  %v661_v8 = vunpack.c.h.bf16 %v623_v1  ;;  %v630_v0 = vld [vmem:[%s1496_s29 + $0x60] sm:$0xff]  ;;  %v631_v1 = vld [vmem:[%s1496_s29 + $0x68] sm:$0xff] }
  0x19   : > { %935 = vmatprep.subr.bf16.mxu0 %v1340_v2  ;;  %1285 = vmatpush1.bf16.msra.mxu1 %v1327_v15 }
  0x1a   : > { %1277 = vmatprep.subr.bf16.mxu1 %v1340_v2 }
  0x1b   : > { %1229 = vmatmul.mubr.msk.bf16.gmra.mrb[4].mxu0 %vm369_vm1, %v1308_v14 }
  0x1c   : > { %477 = vmatprep.mubr.bf16.mxu0 %v1340_v2  ;;  %936 = vmatpush1.bf16.msra.mxu0 %v1325_v12 }
  0x1d   : > { %937 = vmatprep.subr.bf16.mxu0 %v1340_v2  ;;  %1286 = vmatpush1.bf16.msra.mxu1 %v1328_v17 }
  0x1e   : > { %1278 = vmatprep.subr.bf16.mxu1 %v1340_v2 }
  0x20   : > { %938 = vmatpush1.bf16.msra.mxu0 %v1326_v13 }
  0x21   : > { %939 = vmatprep.subr.bf16.mxu0 %v1340_v2  ;;  %1287 = vmatpush1.bf16.msra.mxu1 %v1329_v18 }
  0x22   : > { %1279 = vmatprep.subr.bf16.mxu1 %v1340_v2 }
  0x23   : > { %1230 = vmatmul.mubr.msk.bf16.gmra.mrb[8].mxu0 %vm369_vm1, %v1309_v16  ;;  %v624_v16 = vld [vmem:[%s1496_s29 + $0x30] sm:$0xff] }
  0x24   : > { %487 = vmatprep.mubr.bf16.mxu0 %v1340_v2  ;;  %940 = vmatpush1.bf16.msra.mxu0 %v1327_v15 }
  0x25   : > { %941 = vmatprep.subr.bf16.mxu0 %v1340_v2  ;;  %1288 = vmatpush1.bf16.msra.mxu1 %v1330_v27 }
  0x26   : > { %1280 = vmatprep.subr.bf16.mxu1 %v1340_v2 }
  0x28   : > { %942 = vmatpush1.bf16.msra.mxu0 %v1328_v17  ;;  %v625_v17 = vld [vmem:[%s1496_s29 + $0x38] sm:$0xff] }
  0x29   : > { %943 = vmatprep.subr.bf16.mxu0 %v1340_v2  ;;  %1289 = vmatpush1.bf16.msra.mxu1 %v1331_v29 }
  0x2b   : > { %1231 = vmatmul.mubr.msk.bf16.gmra.mrb[12].mxu0 %vm369_vm1, %v1310_v19 }
  0x2c   : > { %497 = vmatprep.mubr.bf16.mxu0 %v1340_v2  ;;  %944 = vmatpush1.bf16.msra.mxu0 %v1329_v18 }
  0x2d   : > { %945 = vmatprep.subr.bf16.mxu0 %v1340_v2 }
  0x30   : > { %946 = vmatpush1.bf16.msra.mxu0 %v1330_v27 }
  0x31   : > { %947 = vmatprep.subr.bf16.mxu0 %v1340_v2 }
  0x33   : > { %1232 = vmatmul.mubr.msk.bf16.gmra.mrb[16].mxu0 %vm369_vm1, %v1311_v20  ;;  %v662_v20 = vunpack.c.l.bf16 %v624_v16 }
  0x34   : > { %507 = vmatprep.mubr.bf16.mxu0 %v1340_v2  ;;  %948 = vmatpush1.bf16.msra.mxu0 %v1331_v29 }
  0x3b   : > { %1233 = vmatmul.mubr.msk.bf16.gmra.mrb[20].mxu0 %vm369_vm1, %v1312_v21  ;;  %v664_v21 = vunpack.c.l.bf16 %v625_v17 }
  0x3c   : > { %517 = vmatprep.mubr.bf16.mxu0 %v1340_v2 }
  0x43   : > { %1234 = vmatmul.mubr.msk.bf16.gmra.mrb[24].mxu0 %vm369_vm1, %v1313_v22 }
  0x44   : > { %527 = vmatprep.mubr.bf16.mxu0 %v1340_v2 }
  0x4b   : > { %1235 = vmatmul.mubr.msk.bf16.gmra.mrb[28].mxu0 %vm369_vm1, %v1314_v23  ;;  %v663_v23 = vunpack.c.h.bf16 %v624_v16  ;;  %v632_v16 = vld [vmem:[%s1496_s29 + $0x70] sm:$0xff] }
  0x4c   : > { %537 = vmatprep.mubr.bf16.mxu0 %v1340_v2 }
  0x53   : > { %1236 = vmatmul.mubr.msk.bf16.gmra.mrb[32].mxu0 %vm369_vm1, %v1315_v24  ;;  %v665_v24 = vunpack.c.h.bf16 %v625_v17  ;;  %v633_v17 = vld [vmem:[%s1496_s29 + $0x78] sm:$0xff] }
  0x54   : > { %547 = vmatprep.mubr.bf16.mxu0 %v1340_v2 }
  0x5b   : > { %1237 = vmatmul.mubr.msk.bf16.gmra.mrb[36].mxu0 %vm369_vm1, %v1316_v25 }
  0x5c   : > { %557 = vmatprep.mubr.bf16.mxu0 %v1340_v2 }
  0x63   : > { %1238 = vmatmul.mubr.msk.bf16.gmra.mrb[40].mxu0 %vm369_vm1, %v1317_v26 }
  0x64   : > { %567 = vmatprep.mubr.bf16.mxu0 %v1340_v2 }
  0x6b   : > { %1239 = vmatmul.mubr.msk.bf16.gmra.mrb[44].mxu0 %vm369_vm1, %v1318_v28 }
  0x6c   : > { %577 = vmatprep.mubr.bf16.mxu0 %v1340_v2 }
  0x73   : > { %1240 = vmatmul.mubr.msk.bf16.gmra.mrb[48].mxu0 %vm369_vm1, %v1319_v30 }
  0x74   : > { %587 = vmatprep.mubr.bf16.mxu0 %v1340_v2 }
  0x7b   : > { %1241 = vmatmul.mubr.msk.bf16.gmra.mrb[52].mxu0 %vm369_vm1, %v1320_v31 }
  0x7c   : > { %597 = vmatprep.mubr.bf16.mxu0 %v1340_v2 }
  0x83   : > { %1242 = vmatmul.mubr.msk.bf16.gmra.mrb[56].mxu0 %vm369_vm1, %v1321_v32  ;;  %v626_v32 = vld [vmem:[%s1496_s29 + $0x40] sm:$0xff] }
  0x84   : > { %607 = vmatprep.mubr.bf16.mxu0 %v1340_v2 }
  0x8b   : > { %1243 = vmatmul.mubr.msk.bf16.gmra.mrb[60].mxu0 %vm369_vm1, %v1322_v33  ;;  %v627_v33 = vld [vmem:[%s1496_s29 + $0x48] sm:$0xff] }
  0xe6   : > { %v459_v38 = vpop.f32.mrb[0].mxu0 }
  0xe7   : > { %v461_v41 = vpop.f32.mrb[1].mxu0  ;;  %v714_v43 = vmul.f32 %v650_v36, %v459_v38  ;;  %v666_v36 = vunpack.c.l.bf16 %v626_v32 }
  0xe8   : > { %v463_v42 = vpop.f32.mrb[2].mxu0  ;;  %v715_v46 = vmul.f32 %v651_v39, %v461_v41  ;;  %v667_v39 = vunpack.c.h.bf16 %v626_v32  ;;  %v634_v32 = vld [vmem:[%s1496_s29 + $0x80] sm:$0xff] }
  0xe9   : > { %v716_v44 = vmul.f32 %v652_v37, %v463_v42  ;;  %v465_v45 = vpop.f32.mrb[3].mxu0  ;;  %v668_v37 = vunpack.c.l.bf16 %v627_v33 }
  0xea   : > { %v717_v47 = vmul.f32 %v653_v40, %v465_v45  ;;  %v669_v40 = vunpack.c.h.bf16 %v627_v33  ;;  %v635_v33 = vld [vmem:[%s1496_s29 + $0x88] sm:$0xff] }
  0xeb   : > { %v778_v50 = vpack.c.bf16 %v716_v44, %v714_v43 }
  0xec   : > { %v779_v51 = vpack.c.bf16 %v717_v47, %v715_v46 }
  0xee   : > { %v469_v54 = vpop.f32.mrb[4].mxu0  ;;  %1253 = vmatprep.mubr.msk.bf16.mxu0 %vm882_vm2, %v779_v51 }
  0xef   : > { %v471_v57 = vpop.f32.mrb[5].mxu0  ;;  %964 = vmatmul.mubr.bf16.vlgmr.msra.gmra.mrb[64].mxu0 %v778_v50  ;;  %v718_v59 = vmul.f32 %v654_v52, %v469_v54  ;;  %v670_v52 = vunpack.c.l.bf16 %v628_v48 }
  0xf0   : > { %v473_v58 = vpop.f32.mrb[6].mxu0  ;;  %v719_v62 = vmul.f32 %v655_v55, %v471_v57  ;;  %v671_v55 = vunpack.c.h.bf16 %v628_v48  ;;  %v636_v48 = vld [vmem:[%s1496_s29 + $0x90] sm:$0xff] }
  0xf1   : > { %v720_v60 = vmul.f32 %v656_v53, %v473_v58  ;;  %v475_v61 = vpop.f32.mrb[7].mxu0  ;;  %v672_v53 = vunpack.c.l.bf16 %v629_v49 }
  0xf2   : > { %v721_v63 = vmul.f32 %v657_v56, %v475_v61  ;;  %v673_v56 = vunpack.c.h.bf16 %v629_v49  ;;  %v637_v49 = vld [vmem:[%s1496_s29 + $0x98] sm:$0xff] }
  0xf3   : > { %v780_v2 = vpack.c.bf16 %v720_v60, %v718_v59 }
  0xf4   : > { %v781_v3 = vpack.c.bf16 %v721_v63, %v719_v62 }
  0xf6   : > { %v479_v6 = vpop.f32.mrb[8].mxu0  ;;  %1254 = vmatprep.mubr.msk.bf16.mxu1 %vm882_vm2, %v781_v3 }
  0xf7   : > { %v481_v9 = vpop.f32.mrb[9].mxu0  ;;  %972 = vmatmul.mubr.bf16.vlgmr.msra.gmra.mrb[0].mxu1 %v780_v2  ;;  %v722_v11 = vmul.f32 %v658_v4, %v479_v6  ;;  %v674_v4 = vunpack.c.l.bf16 %v630_v0 }
  0xf8   : > { %v483_v10 = vpop.f32.mrb[10].mxu0  ;;  %v723_v14 = vmul.f32 %v659_v7, %v481_v9  ;;  %v675_v7 = vunpack.c.h.bf16 %v630_v0  ;;  %v638_v0 = vld [vmem:[%s1496_s29 + $0xa0] sm:$0xff] }
  0xf9   : > { %v724_v12 = vmul.f32 %v660_v5, %v483_v10  ;;  %v485_v13 = vpop.f32.mrb[11].mxu0  ;;  %v676_v5 = vunpack.c.l.bf16 %v631_v1 }
  0xfa   : > { %v725_v15 = vmul.f32 %v661_v8, %v485_v13  ;;  %v677_v8 = vunpack.c.h.bf16 %v631_v1  ;;  %v639_v1 = vld [vmem:[%s1496_s29 + $0xa8] sm:$0xff] }
  0xfb   : > { %v782_v18 = vpack.c.bf16 %v724_v12, %v722_v11 }
  0xfc   : > { %v783_v19 = vpack.c.bf16 %v725_v15, %v723_v14 }
  0xfe   : > { %v489_v22 = vpop.f32.mrb[12].mxu0  ;;  %1255 = vmatprep.mubr.msk.bf16.mxu1 %vm882_vm2, %v783_v19 }
  0xff   : > { %v491_v25 = vpop.f32.mrb[13].mxu0  ;;  %980 = vmatmul.mubr.bf16.gmra.mrb[4].mxu1 %v782_v18  ;;  %v726_v27 = vmul.f32 %v662_v20, %v489_v22  ;;  %v678_v20 = vunpack.c.l.bf16 %v632_v16 }
 0x100   : > { %v493_v26 = vpop.f32.mrb[14].mxu0  ;;  %v727_v30 = vmul.f32 %v663_v23, %v491_v25  ;;  %v679_v23 = vunpack.c.h.bf16 %v632_v16  ;;  %v640_v16 = vld [vmem:[%s1496_s29 + $0xb0] sm:$0xff] }
 0x101   : > { %v728_v28 = vmul.f32 %v664_v21, %v493_v26  ;;  %v495_v29 = vpop.f32.mrb[15].mxu0  ;;  %v680_v21 = vunpack.c.l.bf16 %v633_v17 }
 0x102   : > { %v729_v31 = vmul.f32 %v665_v24, %v495_v29  ;;  %v681_v24 = vunpack.c.h.bf16 %v633_v17  ;;  %v641_v17 = vld [vmem:[%s1496_s29 + $0xb8] sm:$0xff] }
 0x103   : > { %v784_v34 = vpack.c.bf16 %v728_v28, %v726_v27 }
 0x104   : > { %v785_v35 = vpack.c.bf16 %v729_v31, %v727_v30 }
 0x106   : > { %v499_v38 = vpop.f32.mrb[16].mxu0  ;;  %1256 = vmatprep.mubr.msk.bf16.mxu1 %vm882_vm2, %v785_v35 }
 0x107   : > { %v501_v41 = vpop.f32.mrb[17].mxu0  ;;  %988 = vmatmul.mubr.bf16.gmra.mrb[8].mxu1 %v784_v34  ;;  %v730_v43 = vmul.f32 %v666_v36, %v499_v38  ;;  %v682_v36 = vunpack.c.l.bf16 %v634_v32 }
 0x108   : > { %v503_v42 = vpop.f32.mrb[18].mxu0  ;;  %v731_v46 = vmul.f32 %v667_v39, %v501_v41  ;;  %v683_v39 = vunpack.c.h.bf16 %v634_v32  ;;  %v642_v32 = vld [vmem:[%s1496_s29 + $0xc0] sm:$0xff] }
 0x109   : > { %v732_v44 = vmul.f32 %v668_v37, %v503_v42  ;;  %v505_v45 = vpop.f32.mrb[19].mxu0  ;;  %v684_v37 = vunpack.c.l.bf16 %v635_v33 }
 0x10a   : > { %v733_v47 = vmul.f32 %v669_v40, %v505_v45  ;;  %v685_v40 = vunpack.c.h.bf16 %v635_v33  ;;  %v643_v33 = vld [vmem:[%s1496_s29 + $0xc8] sm:$0xff] }
 0x10b   : > { %v786_v50 = vpack.c.bf16 %v732_v44, %v730_v43 }
 0x10c   : > { %v787_v51 = vpack.c.bf16 %v733_v47, %v731_v46 }
 0x10e   : > { %v509_v54 = vpop.f32.mrb[20].mxu0  ;;  %1257 = vmatprep.mubr.msk.bf16.mxu1 %vm882_vm2, %v787_v51 }
 0x10f   : > { %v511_v57 = vpop.f32.mrb[21].mxu0  ;;  %996 = vmatmul.mubr.bf16.gmra.mrb[12].mxu1 %v786_v50  ;;  %v734_v59 = vmul.f32 %v670_v52, %v509_v54  ;;  %v686_v52 = vunpack.c.l.bf16 %v636_v48 }
 0x110   : > { %v513_v58 = vpop.f32.mrb[22].mxu0  ;;  %v735_v62 = vmul.f32 %v671_v55, %v511_v57  ;;  %v687_v55 = vunpack.c.h.bf16 %v636_v48  ;;  %v644_v48 = vld [vmem:[%s1496_s29 + $0xd0] sm:$0xff] }
 0x111   : > { %v736_v60 = vmul.f32 %v672_v53, %v513_v58  ;;  %v515_v61 = vpop.f32.mrb[23].mxu0  ;;  %v688_v53 = vunpack.c.l.bf16 %v637_v49 }
 0x112   : > { %v737_v63 = vmul.f32 %v673_v56, %v515_v61  ;;  %v689_v56 = vunpack.c.h.bf16 %v637_v49  ;;  %v645_v49 = vld [vmem:[%s1496_s29 + $0xd8] sm:$0xff] }
 0x113   : > { %v788_v2 = vpack.c.bf16 %v736_v60, %v734_v59 }
 0x114   : > { %v789_v3 = vpack.c.bf16 %v737_v63, %v735_v62 }
 0x116   : > { %v519_v6 = vpop.f32.mrb[24].mxu0  ;;  %1258 = vmatprep.mubr.msk.bf16.mxu1 %vm882_vm2, %v789_v3 }
 0x117   : > { %v521_v9 = vpop.f32.mrb[25].mxu0  ;;  %1004 = vmatmul.mubr.bf16.gmra.mrb[16].mxu1 %v788_v2  ;;  %v738_v11 = vmul.f32 %v674_v4, %v519_v6  ;;  %v690_v4 = vunpack.c.l.bf16 %v638_v0 }
 0x118   : > { %v523_v10 = vpop.f32.mrb[26].mxu0  ;;  %v739_v14 = vmul.f32 %v675_v7, %v521_v9  ;;  %v691_v7 = vunpack.c.h.bf16 %v638_v0  ;;  %v646_v0 = vld [vmem:[%s1496_s29 + $0xe0] sm:$0xff] }
 0x119   : > { %v740_v12 = vmul.f32 %v676_v5, %v523_v10  ;;  %v525_v13 = vpop.f32.mrb[27].mxu0  ;;  %v692_v5 = vunpack.c.l.bf16 %v639_v1 }
 0x11a   : > { %v741_v15 = vmul.f32 %v677_v8, %v525_v13  ;;  %v693_v8 = vunpack.c.h.bf16 %v639_v1  ;;  %v647_v1 = vld [vmem:[%s1496_s29 + $0xe8] sm:$0xff] }
 0x11b   : > { %v790_v18 = vpack.c.bf16 %v740_v12, %v738_v11 }
 0x11c   : > { %v791_v19 = vpack.c.bf16 %v741_v15, %v739_v14 }
 0x11e   : > { %v529_v22 = vpop.f32.mrb[28].mxu0  ;;  %1259 = vmatprep.mubr.msk.bf16.mxu1 %vm882_vm2, %v791_v19 }
 0x11f   : > { %v531_v25 = vpop.f32.mrb[29].mxu0  ;;  %1012 = vmatmul.mubr.bf16.gmra.mrb[20].mxu1 %v790_v18  ;;  %v742_v27 = vmul.f32 %v678_v20, %v529_v22  ;;  %v694_v20 = vunpack.c.l.bf16 %v640_v16 }
 0x120   : > { %v533_v26 = vpop.f32.mrb[30].mxu0  ;;  %v743_v30 = vmul.f32 %v679_v23, %v531_v25  ;;  %v695_v23 = vunpack.c.h.bf16 %v640_v16  ;;  %v648_v16 = vld [vmem:[%s1496_s29 + $0xf0] sm:$0xff] }
 0x121   : > { %v744_v28 = vmul.f32 %v680_v21, %v533_v26  ;;  %v535_v29 = vpop.f32.mrb[31].mxu0  ;;  %v696_v21 = vunpack.c.l.bf16 %v641_v17 }
 0x122   : > { %v745_v31 = vmul.f32 %v681_v24, %v535_v29  ;;  %v697_v24 = vunpack.c.h.bf16 %v641_v17  ;;  %v649_v17 = vld [vmem:[%s1496_s29 + $0xf8] sm:$0xff] }
 0x123   : > { %v792_v34 = vpack.c.bf16 %v744_v28, %v742_v27 }
 0x124   : > { %v793_v35 = vpack.c.bf16 %v745_v31, %v743_v30 }
 0x126   : > { %v539_v38 = vpop.f32.mrb[32].mxu0  ;;  %1260 = vmatprep.mubr.msk.bf16.mxu1 %vm882_vm2, %v793_v35 }
 0x127   : > { %v541_v41 = vpop.f32.mrb[33].mxu0  ;;  %1020 = vmatmul.mubr.bf16.gmra.mrb[24].mxu1 %v792_v34  ;;  %v746_v43 = vmul.f32 %v682_v36, %v539_v38  ;;  %v698_v36 = vunpack.c.l.bf16 %v642_v32 }
 0x128   : > { %v543_v42 = vpop.f32.mrb[34].mxu0  ;;  %v747_v46 = vmul.f32 %v683_v39, %v541_v41  ;;  %v699_v39 = vunpack.c.h.bf16 %v642_v32 }
 0x129   : > { %v748_v44 = vmul.f32 %v684_v37, %v543_v42  ;;  %v545_v45 = vpop.f32.mrb[35].mxu0  ;;  %v700_v37 = vunpack.c.l.bf16 %v643_v33 }
 0x12a   : > { %v749_v47 = vmul.f32 %v685_v40, %v545_v45  ;;  %v701_v40 = vunpack.c.h.bf16 %v643_v33 }
 0x12b   : > { %v794_v50 = vpack.c.bf16 %v748_v44, %v746_v43 }
 0x12c   : > { %v795_v51 = vpack.c.bf16 %v749_v47, %v747_v46 }
 0x12e   : > { %v549_v54 = vpop.f32.mrb[36].mxu0  ;;  %1261 = vmatprep.mubr.msk.bf16.mxu1 %vm882_vm2, %v795_v51 }
 0x12f   : > { %v551_v57 = vpop.f32.mrb[37].mxu0  ;;  %1028 = vmatmul.mubr.bf16.gmra.mrb[28].mxu1 %v794_v50  ;;  %v750_v59 = vmul.f32 %v686_v52, %v549_v54  ;;  %v702_v52 = vunpack.c.l.bf16 %v644_v48 }
 0x130   : > { %v553_v58 = vpop.f32.mrb[38].mxu0  ;;  %v751_v62 = vmul.f32 %v687_v55, %v551_v57  ;;  %v703_v55 = vunpack.c.h.bf16 %v644_v48 }
 0x131   : > { %v752_v60 = vmul.f32 %v688_v53, %v553_v58  ;;  %v555_v61 = vpop.f32.mrb[39].mxu0  ;;  %v704_v53 = vunpack.c.l.bf16 %v645_v49 }
 0x132   : > { %v753_v63 = vmul.f32 %v689_v56, %v555_v61  ;;  %v705_v56 = vunpack.c.h.bf16 %v645_v49 }
 0x133   : > { %v796_v2 = vpack.c.bf16 %v752_v60, %v750_v59 }
 0x134   : > { %v797_v3 = vpack.c.bf16 %v753_v63, %v751_v62 }
 0x136   : > { %v559_v6 = vpop.f32.mrb[40].mxu0  ;;  %1262 = vmatprep.mubr.msk.bf16.mxu1 %vm882_vm2, %v797_v3 }
 0x137   : > { %v561_v9 = vpop.f32.mrb[41].mxu0  ;;  %1036 = vmatmul.mubr.bf16.gmra.mrb[32].mxu1 %v796_v2  ;;  %v754_v11 = vmul.f32 %v690_v4, %v559_v6  ;;  %v706_v4 = vunpack.c.l.bf16 %v646_v0 }
 0x138   : > { %v563_v10 = vpop.f32.mrb[42].mxu0  ;;  %v755_v14 = vmul.f32 %v691_v7, %v561_v9  ;;  %v707_v7 = vunpack.c.h.bf16 %v646_v0 }
 0x139   : > { %v756_v12 = vmul.f32 %v692_v5, %v563_v10  ;;  %v565_v13 = vpop.f32.mrb[43].mxu0  ;;  %v708_v5 = vunpack.c.l.bf16 %v647_v1 }
 0x13a   : > { %v757_v15 = vmul.f32 %v693_v8, %v565_v13  ;;  %v709_v8 = vunpack.c.h.bf16 %v647_v1 }
 0x13b   : > { %v798_v18 = vpack.c.bf16 %v756_v12, %v754_v11 }
 0x13c   : > { %v799_v19 = vpack.c.bf16 %v757_v15, %v755_v14 }
 0x13e   : > { %v569_v22 = vpop.f32.mrb[44].mxu0  ;;  %1263 = vmatprep.mubr.msk.bf16.mxu1 %vm882_vm2, %v799_v19 }
 0x13f   : > { %v571_v25 = vpop.f32.mrb[45].mxu0  ;;  %1044 = vmatmul.mubr.bf16.gmra.mrb[36].mxu1 %v798_v18  ;;  %v758_v27 = vmul.f32 %v694_v20, %v569_v22  ;;  %v710_v20 = vunpack.c.l.bf16 %v648_v16 }
 0x140   : > { %v573_v26 = vpop.f32.mrb[46].mxu0  ;;  %v759_v30 = vmul.f32 %v695_v23, %v571_v25  ;;  %v711_v23 = vunpack.c.h.bf16 %v648_v16 }
 0x141   : > { %v760_v28 = vmul.f32 %v696_v21, %v573_v26  ;;  %v575_v29 = vpop.f32.mrb[47].mxu0  ;;  %v712_v21 = vunpack.c.l.bf16 %v649_v17 }
 0x142   : > { %v761_v31 = vmul.f32 %v697_v24, %v575_v29  ;;  %v713_v24 = vunpack.c.h.bf16 %v649_v17 }
 0x143   : > { %v800_v34 = vpack.c.bf16 %v760_v28, %v758_v27 }
 0x144   : > { %v801_v35 = vpack.c.bf16 %v761_v31, %v759_v30 }
 0x146   : > { %v579_v38 = vpop.f32.mrb[48].mxu0  ;;  %1264 = vmatprep.mubr.msk.bf16.mxu1 %vm882_vm2, %v801_v35 }
 0x147   : > { %v581_v41 = vpop.f32.mrb[49].mxu0  ;;  %1052 = vmatmul.mubr.bf16.gmra.mrb[40].mxu1 %v800_v34  ;;  %v762_v43 = vmul.f32 %v698_v36, %v579_v38 }
 0x148   : > { %v583_v42 = vpop.f32.mrb[50].mxu0  ;;  %v763_v46 = vmul.f32 %v699_v39, %v581_v41 }
 0x149   : > { %v764_v44 = vmul.f32 %v700_v37, %v583_v42  ;;  %v585_v45 = vpop.f32.mrb[51].mxu0 }
 0x14a   : > { %v765_v47 = vmul.f32 %v701_v40, %v585_v45 }
 0x14b   : > { %v802_v50 = vpack.c.bf16 %v764_v44, %v762_v43 }
 0x14c   : > { %v803_v51 = vpack.c.bf16 %v765_v47, %v763_v46 }
 0x14e   : > { %v589_v54 = vpop.f32.mrb[52].mxu0  ;;  %1265 = vmatprep.mubr.msk.bf16.mxu1 %vm882_vm2, %v803_v51 }
 0x14f   : > { %v591_v57 = vpop.f32.mrb[53].mxu0  ;;  %1060 = vmatmul.mubr.bf16.gmra.mrb[44].mxu1 %v802_v50  ;;  %v766_v59 = vmul.f32 %v702_v52, %v589_v54 }
 0x150   : > { %v593_v58 = vpop.f32.mrb[54].mxu0  ;;  %v767_v62 = vmul.f32 %v703_v55, %v591_v57 }
 0x151   : > { %v768_v60 = vmul.f32 %v704_v53, %v593_v58  ;;  %v595_v61 = vpop.f32.mrb[55].mxu0 }
 0x152   : > { %v769_v63 = vmul.f32 %v705_v56, %v595_v61 }
 0x153   : > { %v804_v2 = vpack.c.bf16 %v768_v60, %v766_v59 }
 0x154   : > { %v805_v3 = vpack.c.bf16 %v769_v63, %v767_v62 }
 0x156   : > { %v599_v6 = vpop.f32.mrb[56].mxu0  ;;  %1266 = vmatprep.mubr.msk.bf16.mxu1 %vm882_vm2, %v805_v3 }
 0x157   : > { %v601_v9 = vpop.f32.mrb[57].mxu0  ;;  %1068 = vmatmul.mubr.bf16.gmra.mrb[48].mxu1 %v804_v2  ;;  %v770_v11 = vmul.f32 %v706_v4, %v599_v6 }
 0x158   : > { %v603_v10 = vpop.f32.mrb[58].mxu0  ;;  %v771_v14 = vmul.f32 %v707_v7, %v601_v9 }
 0x159   : > { %v772_v12 = vmul.f32 %v708_v5, %v603_v10  ;;  %v605_v13 = vpop.f32.mrb[59].mxu0 }
 0x15a   : > { %v773_v15 = vmul.f32 %v709_v8, %v605_v13 }
 0x15b   : > { %v806_v18 = vpack.c.bf16 %v772_v12, %v770_v11 }
 0x15c   : > { %v807_v19 = vpack.c.bf16 %v773_v15, %v771_v14 }
 0x15e   : > { %v609_v22 = vpop.f32.mrb[60].mxu0  ;;  %1267 = vmatprep.mubr.msk.bf16.mxu1 %vm882_vm2, %v807_v19 }
 0x15f   : > { %v611_v25 = vpop.f32.mrb[61].mxu0  ;;  %1076 = vmatmul.mubr.bf16.gmra.mrb[52].mxu1 %v806_v18  ;;  %v774_v27 = vmul.f32 %v710_v20, %v609_v22 }
 0x160   : > { %v613_v26 = vpop.f32.mrb[62].mxu0  ;;  %v775_v30 = vmul.f32 %v711_v23, %v611_v25 }
 0x161   : > { %v776_v28 = vmul.f32 %v712_v21, %v613_v26  ;;  %v615_v29 = vpop.f32.mrb[63].mxu0 }
 0x162   : > { %v777_v31 = vmul.f32 %v713_v24, %v615_v29 }
 0x163   : > { %v808_v32 = vpack.c.bf16 %v776_v28, %v774_v27 }
 0x164   : > { %v809_v33 = vpack.c.bf16 %v777_v31, %v775_v30 }
 0x166   : > { %1268 = vmatprep.mubr.msk.bf16.mxu1 %vm882_vm2, %v809_v33 }
 0x167   : > { %1084 = vmatmul.mubr.bf16.gmra.mrb[56].mxu1 %v808_v32 }
 0x1c2   : > { %v965_v34 = vpop.f32.mrb[64].mxu0 }
 0x1c3   : > { %1093 = vst.msk [vmem:[%s1551_s6] sm:$0xff] %vm1092_vm3, %v965_v34  ;;  %v967_v35 = vpop.f32.mrb[65].mxu0 }
 0x1c4   : > { %v968_v36 = vpop.f32.mrb[66].mxu0 }
 0x1c5   : > { %1094 = vst.msk [vmem:[%s1551_s6 + $0x8] sm:$0xff] %vm1092_vm3, %v968_v36  ;;  %v970_v37 = vpop.f32.mrb[67].mxu0 }
 0x1ca   : > { %v973_v38 = vpop.f32.mrb[0].mxu1 }
 0x1cb   : > { %1095 = vst.msk [vmem:[%s1551_s6 + $0x10] sm:$0xff] %vm1092_vm3, %v973_v38  ;;  %v975_v39 = vpop.f32.mrb[1].mxu1 }
 0x1cc   : > { %v976_v40 = vpop.f32.mrb[2].mxu1 }
 0x1cd   : > { %1096 = vst.msk [vmem:[%s1551_s6 + $0x18] sm:$0xff] %vm1092_vm3, %v976_v40  ;;  %v978_v41 = vpop.f32.mrb[3].mxu1 }
 0x1d2   : > { %v981_v42 = vpop.f32.mrb[4].mxu1 }
 0x1d3   : > { %1097 = vst.msk [vmem:[%s1551_s6 + $0x20] sm:$0xff] %vm1092_vm3, %v981_v42  ;;  %v983_v43 = vpop.f32.mrb[5].mxu1 }
 0x1d4   : > { %v984_v44 = vpop.f32.mrb[6].mxu1 }
 0x1d5   : > { %1098 = vst.msk [vmem:[%s1551_s6 + $0x28] sm:$0xff] %vm1092_vm3, %v984_v44  ;;  %v986_v45 = vpop.f32.mrb[7].mxu1 }
 0x1da   : > { %v989_v46 = vpop.f32.mrb[8].mxu1 }
 0x1db   : > { %1099 = vst.msk [vmem:[%s1551_s6 + $0x30] sm:$0xff] %vm1092_vm3, %v989_v46  ;;  %v991_v47 = vpop.f32.mrb[9].mxu1 }
 0x1dc   : > { %v992_v48 = vpop.f32.mrb[10].mxu1 }
 0x1dd   : > { %1100 = vst.msk [vmem:[%s1551_s6 + $0x38] sm:$0xff] %vm1092_vm3, %v992_v48  ;;  %v994_v49 = vpop.f32.mrb[11].mxu1 }
 0x1e2   : > { %v997_v50 = vpop.f32.mrb[12].mxu1 }
 0x1e3   : > { %1101 = vst.msk [vmem:[%s1551_s6 + $0x40] sm:$0xff] %vm1092_vm3, %v997_v50  ;;  %v999_v51 = vpop.f32.mrb[13].mxu1 }
 0x1e4   : > { %v1000_v52 = vpop.f32.mrb[14].mxu1 }
 0x1e5   : > { %1102 = vst.msk [vmem:[%s1551_s6 + $0x48] sm:$0xff] %vm1092_vm3, %v1000_v52  ;;  %v1002_v53 = vpop.f32.mrb[15].mxu1 }
 0x1ea   : > { %v1005_v54 = vpop.f32.mrb[16].mxu1 }
 0x1eb   : > { %1103 = vst.msk [vmem:[%s1551_s6 + $0x50] sm:$0xff] %vm1092_vm3, %v1005_v54  ;;  %v1007_v55 = vpop.f32.mrb[17].mxu1 }
 0x1ec   : > { %v1008_v56 = vpop.f32.mrb[18].mxu1 }
 0x1ed   : > { %1104 = vst.msk [vmem:[%s1551_s6 + $0x58] sm:$0xff] %vm1092_vm3, %v1008_v56  ;;  %v1010_v57 = vpop.f32.mrb[19].mxu1 }
 0x1f2   : > { %v1013_v58 = vpop.f32.mrb[20].mxu1 }
 0x1f3   : > { %1105 = vst.msk [vmem:[%s1551_s6 + $0x60] sm:$0xff] %vm1092_vm3, %v1013_v58  ;;  %v1015_v59 = vpop.f32.mrb[21].mxu1 }
 0x1f4   : > { %v1016_v60 = vpop.f32.mrb[22].mxu1 }
 0x1f5   : > { %1106 = vst.msk [vmem:[%s1551_s6 + $0x68] sm:$0xff] %vm1092_vm3, %v1016_v60  ;;  %v1018_v61 = vpop.f32.mrb[23].mxu1 }
 0x1fa   : > { %v1021_v62 = vpop.f32.mrb[24].mxu1 }
 0x1fb   : > { %1107 = vst.msk [vmem:[%s1551_s6 + $0x70] sm:$0xff] %vm1092_vm3, %v1021_v62  ;;  %v1023_v63 = vpop.f32.mrb[25].mxu1 }
 0x1fc   : > { %v1024_v0 = vpop.f32.mrb[26].mxu1 }
 0x1fd   : > { %1108 = vst.msk [vmem:[%s1551_s6 + $0x78] sm:$0xff] %vm1092_vm3, %v1024_v0  ;;  %v1026_v1 = vpop.f32.mrb[27].mxu1 }
 0x202   : > { %v1029_v2 = vpop.f32.mrb[28].mxu1 }
 0x203   : > { %1109 = vst.msk [vmem:[%s1551_s6 + $0x80] sm:$0xff] %vm1092_vm3, %v1029_v2  ;;  %v1031_v3 = vpop.f32.mrb[29].mxu1 }
 0x204   : > { %v1032_v4 = vpop.f32.mrb[30].mxu1 }
 0x205   : > { %1110 = vst.msk [vmem:[%s1551_s6 + $0x88] sm:$0xff] %vm1092_vm3, %v1032_v4  ;;  %v1034_v5 = vpop.f32.mrb[31].mxu1 }
 0x20a   : > { %v1037_v6 = vpop.f32.mrb[32].mxu1 }
 0x20b   : > { %1111 = vst.msk [vmem:[%s1551_s6 + $0x90] sm:$0xff] %vm1092_vm3, %v1037_v6  ;;  %v1039_v7 = vpop.f32.mrb[33].mxu1 }
 0x20c   : > { %v1040_v8 = vpop.f32.mrb[34].mxu1 }
 0x20d   : > { %1112 = vst.msk [vmem:[%s1551_s6 + $0x98] sm:$0xff] %vm1092_vm3, %v1040_v8  ;;  %v1042_v9 = vpop.f32.mrb[35].mxu1 }
 0x212   : > { %v1045_v10 = vpop.f32.mrb[36].mxu1 }
 0x213   : > { %1113 = vst.msk [vmem:[%s1551_s6 + $0xa0] sm:$0xff] %vm1092_vm3, %v1045_v10  ;;  %v1047_v11 = vpop.f32.mrb[37].mxu1 }
 0x214   : > { %v1048_v12 = vpop.f32.mrb[38].mxu1 }
 0x215   : > { %1114 = vst.msk [vmem:[%s1551_s6 + $0xa8] sm:$0xff] %vm1092_vm3, %v1048_v12  ;;  %v1050_v13 = vpop.f32.mrb[39].mxu1 }
 0x21a   : > { %v1053_v14 = vpop.f32.mrb[40].mxu1 }
 0x21b   : > { %1115 = vst.msk [vmem:[%s1551_s6 + $0xb0] sm:$0xff] %vm1092_vm3, %v1053_v14  ;;  %v1055_v15 = vpop.f32.mrb[41].mxu1 }
 0x21c   : > { %v1056_v16 = vpop.f32.mrb[42].mxu1 }
 0x21d   : > { %1116 = vst.msk [vmem:[%s1551_s6 + $0xb8] sm:$0xff] %vm1092_vm3, %v1056_v16  ;;  %v1058_v17 = vpop.f32.mrb[43].mxu1 }
 0x222   : > { %v1061_v18 = vpop.f32.mrb[44].mxu1 }
 0x223   : > { %1117 = vst.msk [vmem:[%s1551_s6 + $0xc0] sm:$0xff] %vm1092_vm3, %v1061_v18  ;;  %v1063_v19 = vpop.f32.mrb[45].mxu1 }
 0x224   : > { %v1064_v20 = vpop.f32.mrb[46].mxu1 }
 0x225   : > { %1118 = vst.msk [vmem:[%s1551_s6 + $0xc8] sm:$0xff] %vm1092_vm3, %v1064_v20  ;;  %v1066_v21 = vpop.f32.mrb[47].mxu1 }
 0x22a   : > { %v1069_v22 = vpop.f32.mrb[48].mxu1 }
 0x22b   : > { %1119 = vst.msk [vmem:[%s1551_s6 + $0xd0] sm:$0xff] %vm1092_vm3, %v1069_v22  ;;  %v1071_v23 = vpop.f32.mrb[49].mxu1 }
 0x22c   : > { %v1072_v24 = vpop.f32.mrb[50].mxu1 }
 0x22d   : > { %1120 = vst.msk [vmem:[%s1551_s6 + $0xd8] sm:$0xff] %vm1092_vm3, %v1072_v24  ;;  %v1074_v25 = vpop.f32.mrb[51].mxu1 }
 0x232   : > { %v1077_v26 = vpop.f32.mrb[52].mxu1 }
 0x233   : > { %1121 = vst.msk [vmem:[%s1551_s6 + $0xe0] sm:$0xff] %vm1092_vm3, %v1077_v26  ;;  %v1079_v27 = vpop.f32.mrb[53].mxu1 }
 0x234   : > { %v1080_v28 = vpop.f32.mrb[54].mxu1 }
 0x235   : > { %1122 = vst.msk [vmem:[%s1551_s6 + $0xe8] sm:$0xff] %vm1092_vm3, %v1080_v28  ;;  %v1082_v29 = vpop.f32.mrb[55].mxu1 }
 0x23a   : > { %v1085_v30 = vpop.f32.mrb[56].mxu1 }
 0x23b   : > { %1123 = vst.msk [vmem:[%s1551_s6 + $0xf0] sm:$0xff] %vm1092_vm3, %v1085_v30  ;;  %v1087_v31 = vpop.f32.mrb[57].mxu1 }
 0x23c   : > { %v1088_v32 = vpop.f32.mrb[58].mxu1 }
 0x23d   : > { %1124 = vst.msk [vmem:[%s1551_s6 + $0xf8] sm:$0xff] %vm1092_vm3, %v1088_v32  ;;  %v1090_v33 = vpop.f32.mrb[59].mxu1 }
 0x23e PF: > { %s14_s15 = sadd.s32 1, %s1338_s15  }
 0x23f   : > { %p11_p4 = scmp.ge.s32.totalorder %s14_s15, 4  }
 0x241   :  { %13 = sbr.rel (!%p11_p4) target bundleno = 1 (0x1), region = 69 }

</bundles_post_ra>
